<compile_context>
chip_gen: v7x
topology: tpu7x:2x2x1
jax: 0.10.0
libtpu: 0.0.40
codegen_flags: <defaults>
</compile_context>

<pallas_src>
import functools

import jax
import jax.numpy as jnp
from jax.experimental import pallas as pl
from jax.experimental.pallas import tpu as pltpu


def film_kernel(z_ref, ec_ref, ecw1_ref, w1_ref, w2_ref, ws_ref, wb_ref,
                b1_ref, b2_ref, bs_ref, bb_ref, scale_ref, bias_ref):
    x = z_ref[...]                                      # (rt, H) f32
    rt, h_dim = x.shape
    d = ec_ref.shape[0]
    inv_h = 1.0 / h_dim

    # ---- LayerNorm stats of x (f32) ----
    mu_x = jnp.mean(x, axis=-1, keepdims=True)          # (rt, 1)
    xc = x - mu_x                                       # (rt, H)
    vx = jnp.mean(jnp.square(xc), axis=-1, keepdims=True)

    # ---- One MXU pass over the row tile: xc @ (diag(ln_w) W1) ----
    # bf16 operands, f32 accumulate.
    xcw1 = jnp.dot(xc.astype(jnp.bfloat16), w1_ref[...],
                   preferred_element_type=jnp.float32)  # (rt, half)

    ec = ec_ref[...]                                    # (D, H) centered emb, f32
    ecw1 = ecw1_ref[...]                                # (D, half) f32 (precomputed)
    b1 = b1_ref[...]                                    # (1, half)  (ln_b@W1 + b1)

    # ---- Per-depth LN via separability: var(x+e) = var(x)+var(e)+2 cov(x,e) ----
    # D is a small static int -> unrolled; all stats stay f32; no transposes.
    f1_rows = []
    for di in range(d):
        e_row = ec[di:di + 1, :]                                      # (1, H)
        ve = jnp.mean(jnp.square(e_row), axis=-1, keepdims=True)      # (1, 1)
        cov = jnp.sum(xc * e_row, axis=-1, keepdims=True) * inv_h     # (rt, 1)
        inv_sigma = jax.lax.rsqrt(vx + ve + 2.0 * cov + 1e-6)         # (rt, 1)
        pre = xcw1 + ecw1[di:di + 1, :]                               # (rt, half)
        f1_rows.append(jnp.maximum(inv_sigma * pre + b1, 0.0))
    f1 = jnp.concatenate(f1_rows, axis=0)               # (D*rt, half), depth-major

    # ---- Layer 2 + heads (bf16 operands, f32 accumulate) ----
    f2 = jnp.dot(f1.astype(jnp.bfloat16), w2_ref[...],
                 preferred_element_type=jnp.float32) + b2_ref[...]
    f2 = jnp.maximum(f2, 0.0).astype(jnp.bfloat16)      # (D*rt, half)

    s = jnp.dot(f2, ws_ref[...], preferred_element_type=jnp.float32) + bs_ref[...]
    b = jnp.dot(f2, wb_ref[...], preferred_element_type=jnp.float32) + bb_ref[...]

    c = s.shape[-1]
    scale_ref[...] = s.reshape(d, rt, c)
    bias_ref[...] = b.reshape(d, rt, c)


def _pick_row_tile(n, max_rows):
    """Largest multiple-of-8 divisor of n that is <= max_rows (or n itself)."""
    if n <= max_rows:
        return n
    t = (max_rows // 8) * 8
    while t >= 8:
        if n % t == 0:
            return t
        t -= 8
    # TODO(synk): pad N to a tileable size instead of falling back to no tiling.
    return n


def multiview_film_forward(z, params, *, depth, max_row_tile=512):
    """z: (B, T, V, hidden) f32 -> (scales, biases) each (V, depth, B, T, channel)."""
    B, T, V, H = z.shape
    N = B * T
    half = H // 2
    C = params["ws"].shape[-1]

    # View-major, flatten (b t); hidden on the lane axis.
    z_v = jnp.transpose(z, (2, 0, 1, 3)).reshape(V, N, H)

    # Fold LayerNorm affine into the first Linear (exact linear fold):
    #   (hn*g + b) @ W1 + b1 == hn @ (diag(g) W1) + (b @ W1 + b1)
    w1p = params["w1"] * jnp.swapaxes(params["ln_w"], 1, 2)            # (V, H, half)
    b1p = jnp.matmul(params["ln_b"], params["w1"]) + params["b1"]      # (V, 1, half)

    # Separable layer-embedding precompute (parameters only, done once per call):
    emb = params["emb"]                                                # (V, D, H)
    ec = emb - jnp.mean(emb, axis=-1, keepdims=True)                   # centered emb
    ecw1 = jnp.matmul(ec, w1p)                                         # (V, D, half) f32

    # bf16 matmul operands; LN stats / biases stay f32.
    w1_b = w1p.astype(jnp.bfloat16)
    w2_b = params["w2"].astype(jnp.bfloat16)
    ws_b = params["ws"].astype(jnp.bfloat16)
    wb_b = params["wb"].astype(jnp.bfloat16)

    rt = _pick_row_tile(N, max_row_tile)
    R = N // rt

    def vspec(tail):  # per-view constant block (not re-DMA'd across the row axis)
        return pl.BlockSpec((None,) + tail, lambda v, r: (v,) + (0,) * len(tail))

    scales, biases = pl.pallas_call(
        film_kernel,
        grid=(V, R),
        in_specs=[
            pl.BlockSpec((None, rt, H), lambda v, r: (v, r, 0)),       # z rows
            vspec((depth, H)),                                         # centered emb
            vspec((depth, half)),                                      # ec @ W1'
            vspec((H, half)),                                          # W1' (bf16)
            vspec((half, half)),                                       # W2  (bf16)
            vspec((half, C)),                                          # Ws  (bf16)
            vspec((half, C)),                                          # Wb  (bf16)
            vspec((1, half)),                                          # b1'
            vspec((1, half)),                                          # b2
            vspec((1, C)),                                             # bs
            vspec((1, C)),                                             # bb
        ],
        out_specs=(
            pl.BlockSpec((None, depth, rt, C), lambda v, r: (v, 0, r, 0)),
            pl.BlockSpec((None, depth, rt, C), lambda v, r: (v, 0, r, 0)),
        ),
        out_shape=(
            jax.ShapeDtypeStruct((V, depth, N, C), jnp.float32),
            jax.ShapeDtypeStruct((V, depth, N, C), jnp.float32),
        ),
        compiler_params=pltpu.CompilerParams(
            dimension_semantics=("parallel", "parallel"),
            vmem_limit_bytes=48 * 1024 * 1024),
    )(z_v, ec, ecw1, w1_b, w2_b, ws_b, wb_b,
      b1p, params["b2"], params["bs"], params["bb"])

    # (V, D, N, C) -> (V, D, B, T, C): contiguous reshape only, no extra HBM pass.
    return (scales.reshape(V, depth, B, T, C),
            biases.reshape(V, depth, B, T, C))


def init_params(key, *, views, depth, hidden, channel):
    half = hidden // 2
    ks = jax.random.split(key, 12)
    s = 0.05
    return {
        "emb":  s * jax.random.normal(ks[0], (views, depth, hidden), jnp.float32),
        "ln_w": jnp.ones((views, 1, hidden), jnp.float32)
                + 0.01 * jax.random.normal(ks[1], (views, 1, hidden), jnp.float32),
        "ln_b": s * jax.random.normal(ks[2], (views, 1, hidden), jnp.float32),
        "w1":   s * jax.random.normal(ks[3], (views, hidden, half), jnp.float32),
        "b1":   s * jax.random.normal(ks[4], (views, 1, half), jnp.float32),
        "w2":   s * jax.random.normal(ks[5], (views, half, half), jnp.float32),
        "b2":   s * jax.random.normal(ks[6], (views, 1, half), jnp.float32),
        "ws":   s * jax.random.normal(ks[7], (views, half, channel), jnp.float32),
        "bs":   s * jax.random.normal(ks[8], (views, 1, channel), jnp.float32),
        "wb":   s * jax.random.normal(ks[9], (views, half, channel), jnp.float32),
        "bb":   s * jax.random.normal(ks[10], (views, 1, channel), jnp.float32),
    }


def reference_forward(z, params, *, depth):
    """Pure-JAX f32 replica of MultiViewFiLM(film_once=False).forward."""
    B, T, V, H = z.shape
    C = params["ws"].shape[-1]
    scales, biases = [], []
    for v in range(V):
        x = z[:, :, v, :].reshape(B * T, H)
        s_d, b_d = [], []
        for d in range(depth):
            h = x + params["emb"][v, d]
            mu = jnp.mean(h, axis=-1, keepdims=True)
            var = jnp.mean(jnp.square(h - mu), axis=-1, keepdims=True)
            hn = (h - mu) / jnp.sqrt(var + 1e-6)
            hn = hn * params["ln_w"][v] + params["ln_b"][v]
            f = jnp.maximum(hn @ params["w1"][v] + params["b1"][v], 0.0)
            f = jnp.maximum(f @ params["w2"][v] + params["b2"][v], 0.0)
            s_d.append((f @ params["ws"][v] + params["bs"][v]).reshape(B, T, C))
            b_d.append((f @ params["wb"][v] + params["bb"][v]).reshape(B, T, C))
        scales.append(jnp.stack(s_d))
        biases.append(jnp.stack(b_d))
    return jnp.stack(scales), jnp.stack(biases)


if __name__ == "__main__":
    # small config consistent with the module: hidden=32, channel=8, views=2,
    # depth=3, film_once=False (FiLMGenerator path), B=2, horizons(T)=8
    B, T, V, H, C, D = 2, 8, 2, 32, 8, 3

    key = jax.random.PRNGKey(0)
    kz, kp = jax.random.split(key)
    z = jax.random.normal(kz, (B, T, V, H), jnp.float32)
    params = init_params(kp, views=V, depth=D, hidden=H, channel=C)

    fwd = jax.jit(functools.partial(multiview_film_forward, depth=D))
    scales, biases = fwd(z, params)
    jax.block_until_ready((scales, biases))

    ref_s, ref_b = reference_forward(z, params, depth=D)
    assert scales.shape == (V, D, B, T, C) and biases.shape == (V, D, B, T, C)
    # bf16 matmul operands (f32 accumulate) -> validate at a bf16-appropriate
    # tolerance instead of silently loosening an f32 test.
    assert jnp.allclose(scales, ref_s, atol=1e-2, rtol=1e-2)
    assert jnp.allclose(biases, ref_b, atol=1e-2, rtol=1e-2)

    print("KERNEL_OK")
</pallas_src>

<mosaic_0001>
module attributes {stable_mosaic.version = 11 : i64} {
  func.func @film_kernel(%arg0: i32, %arg1: i32, %arg2: memref<1x16x32xf32, #tpu.memory_space<vmem>>, %arg3: memref<1x3x32xf32, #tpu.memory_space<vmem>>, %arg4: memref<1x3x16xf32, #tpu.memory_space<vmem>>, %arg5: memref<1x32x16xbf16, #tpu.memory_space<vmem>>, %arg6: memref<1x16x16xbf16, #tpu.memory_space<vmem>>, %arg7: memref<1x16x8xbf16, #tpu.memory_space<vmem>>, %arg8: memref<1x16x8xbf16, #tpu.memory_space<vmem>>, %arg9: memref<1x1x16xf32, #tpu.memory_space<vmem>>, %arg10: memref<1x1x16xf32, #tpu.memory_space<vmem>>, %arg11: memref<1x1x8xf32, #tpu.memory_space<vmem>>, %arg12: memref<1x1x8xf32, #tpu.memory_space<vmem>>, %arg13: memref<1x3x16x8xf32, #tpu.memory_space<vmem>>, %arg14: memref<1x3x16x8xf32, #tpu.memory_space<vmem>>) attributes {dimension_semantics = [#tpu.dimension_semantics<parallel>, #tpu.dimension_semantics<parallel>], iteration_bounds = array<i64: 2, 1>, scalar_prefetch = 0 : i64, scratch_operands = 0 : i64, tpu.core_type = #tpu.core_type<tc>, window_params = [{transform_indices = @transform_0, window_bounds = array<i64: 1, 16, 32>}, {transform_indices = @transform_1, window_bounds = array<i64: 1, 3, 32>}, {transform_indices = @transform_2, window_bounds = array<i64: 1, 3, 16>}, {transform_indices = @transform_3, window_bounds = array<i64: 1, 32, 16>}, {transform_indices = @transform_4, window_bounds = array<i64: 1, 16, 16>}, {transform_indices = @transform_5, window_bounds = array<i64: 1, 16, 8>}, {transform_indices = @transform_6, window_bounds = array<i64: 1, 16, 8>}, {transform_indices = @transform_7, window_bounds = array<i64: 1, 1, 16>}, {transform_indices = @transform_8, window_bounds = array<i64: 1, 1, 16>}, {transform_indices = @transform_9, window_bounds = array<i64: 1, 1, 8>}, {transform_indices = @transform_10, window_bounds = array<i64: 1, 1, 8>}, {transform_indices = @transform_11, window_bounds = array<i64: 1, 3, 16, 8>}, {transform_indices = @transform_12, window_bounds = array<i64: 1, 3, 16, 8>}]} {
    %c0 = arith.constant 0 : index
    %c0_0 = arith.constant 0 : index
    %c0_1 = arith.constant 0 : index
    %0 = vector.load %arg2[%c0, %c0_0, %c0_1] : memref<1x16x32xf32, #tpu.memory_space<vmem>>, vector<1x16x32xf32>
    %1 = vector.shape_cast %0 : vector<1x16x32xf32> to vector<16x32xf32>
    %cst = arith.constant dense<0.000000e+00> : vector<16xf32>
    %2 = vector.multi_reduction <add>, %1, %cst [1] : vector<16x32xf32> to vector<16xf32>
    %3 = vector.shape_cast %2 : vector<16xf32> to vector<16x1xf32>
    %cst_2 = arith.constant 3.200000e+01 : f32
    %4 = vector.broadcast %cst_2 : f32 to vector<16x1xf32>
    %5 = arith.divf %3, %4 : vector<16x1xf32>
    %6 = vector.broadcast %5 : vector<16x1xf32> to vector<16x32xf32>
    %7 = arith.subf %1, %6 : vector<16x32xf32>
    %8 = arith.mulf %7, %7 : vector<16x32xf32>
    %cst_3 = arith.constant dense<0.000000e+00> : vector<16xf32>
    %9 = vector.multi_reduction <add>, %8, %cst_3 [1] : vector<16x32xf32> to vector<16xf32>
    %10 = vector.shape_cast %9 : vector<16xf32> to vector<16x1xf32>
    %cst_4 = arith.constant 3.200000e+01 : f32
    %11 = vector.broadcast %cst_4 : f32 to vector<16x1xf32>
    %12 = arith.divf %10, %11 : vector<16x1xf32>
    %13 = arith.truncf %7 : vector<16x32xf32> to vector<16x32xbf16>
    %c0_5 = arith.constant 0 : index
    %c0_6 = arith.constant 0 : index
    %c0_7 = arith.constant 0 : index
    %14 = vector.load %arg5[%c0_5, %c0_6, %c0_7] : memref<1x32x16xbf16, #tpu.memory_space<vmem>>, vector<1x32x16xbf16>
    %15 = vector.shape_cast %14 : vector<1x32x16xbf16> to vector<32x16xbf16>
    %cst_8 = arith.constant dense<0.000000e+00> : vector<16x16xf32>
    %16 = tpu.matmul %13, %15, %cst_8 {dimension_numbers = #tpu.dot_dimension_numbers<[1], [0], [0], [1], [0, 0, 1, 1], [], []>} : vector<16x32xbf16>, vector<32x16xbf16>, vector<16x16xf32> -> vector<16x16xf32>
    %c0_9 = arith.constant 0 : index
    %c0_10 = arith.constant 0 : index
    %c0_11 = arith.constant 0 : index
    %17 = vector.load %arg3[%c0_9, %c0_10, %c0_11] : memref<1x3x32xf32, #tpu.memory_space<vmem>>, vector<1x3x32xf32>
    %18 = vector.shape_cast %17 : vector<1x3x32xf32> to vector<3x32xf32>
    %c0_12 = arith.constant 0 : index
    %c0_13 = arith.constant 0 : index
    %c0_14 = arith.constant 0 : index
    %19 = vector.load %arg4[%c0_12, %c0_13, %c0_14] : memref<1x3x16xf32, #tpu.memory_space<vmem>>, vector<1x3x16xf32>
    %20 = vector.shape_cast %19 : vector<1x3x16xf32> to vector<3x16xf32>
    %c0_15 = arith.constant 0 : index
    %c0_16 = arith.constant 0 : index
    %c0_17 = arith.constant 0 : index
    %21 = vector.load %arg9[%c0_15, %c0_16, %c0_17] : memref<1x1x16xf32, #tpu.memory_space<vmem>>, vector<1x1x16xf32>
    %22 = vector.shape_cast %21 : vector<1x1x16xf32> to vector<1x16xf32>
    %23 = vector.extract_strided_slice %18 {offsets = [0, 0], sizes = [1, 32], strides = [1, 1]} : vector<3x32xf32> to vector<1x32xf32>
    %24 = arith.mulf %23, %23 : vector<1x32xf32>
    %cst_18 = arith.constant dense<0.000000e+00> : vector<1xf32>
    %25 = vector.multi_reduction <add>, %24, %cst_18 [1] : vector<1x32xf32> to vector<1xf32>
    %26 = vector.shape_cast %25 : vector<1xf32> to vector<1x1xf32>
    %cst_19 = arith.constant 3.200000e+01 : f32
    %27 = vector.broadcast %cst_19 : f32 to vector<1x1xf32>
    %28 = arith.divf %26, %27 : vector<1x1xf32>
    %29 = vector.broadcast %23 : vector<1x32xf32> to vector<16x32xf32>
    %30 = arith.mulf %7, %29 : vector<16x32xf32>
    %cst_20 = arith.constant dense<0.000000e+00> : vector<16xf32>
    %31 = vector.multi_reduction <add>, %30, %cst_20 [1] : vector<16x32xf32> to vector<16xf32>
    %32 = vector.shape_cast %31 : vector<16xf32> to vector<16x1xf32>
    %cst_21 = arith.constant 3.125000e-02 : f32
    %33 = vector.broadcast %cst_21 : f32 to vector<16x1xf32>
    %34 = arith.mulf %32, %33 : vector<16x1xf32>
    %35 = vector.broadcast %28 : vector<1x1xf32> to vector<16x1xf32>
    %36 = arith.addf %12, %35 : vector<16x1xf32>
    %cst_22 = arith.constant 2.000000e+00 : f32
    %37 = vector.broadcast %cst_22 : f32 to vector<16x1xf32>
    %38 = arith.mulf %37, %34 : vector<16x1xf32>
    %39 = arith.addf %36, %38 : vector<16x1xf32>
    %cst_23 = arith.constant 9.99999997E-7 : f32
    %40 = vector.broadcast %cst_23 : f32 to vector<16x1xf32>
    %41 = arith.addf %39, %40 : vector<16x1xf32>
    %42 = math.rsqrt %41 : vector<16x1xf32>
    %43 = vector.extract_strided_slice %20 {offsets = [0, 0], sizes = [1, 16], strides = [1, 1]} : vector<3x16xf32> to vector<1x16xf32>
    %44 = vector.broadcast %43 : vector<1x16xf32> to vector<16x16xf32>
    %45 = arith.addf %16, %44 : vector<16x16xf32>
    %46 = vector.broadcast %42 : vector<16x1xf32> to vector<16x16xf32>
    %47 = arith.mulf %46, %45 : vector<16x16xf32>
    %48 = vector.broadcast %22 : vector<1x16xf32> to vector<16x16xf32>
    %49 = arith.addf %47, %48 : vector<16x16xf32>
    %cst_24 = arith.constant 0.000000e+00 : f32
    %50 = vector.broadcast %cst_24 : f32 to vector<16x16xf32>
    %51 = arith.maximumf %49, %50 : vector<16x16xf32>
    %52 = vector.extract_strided_slice %18 {offsets = [1, 0], sizes = [1, 32], strides = [1, 1]} : vector<3x32xf32> to vector<1x32xf32>
    %53 = arith.mulf %52, %52 : vector<1x32xf32>
    %cst_25 = arith.constant dense<0.000000e+00> : vector<1xf32>
    %54 = vector.multi_reduction <add>, %53, %cst_25 [1] : vector<1x32xf32> to vector<1xf32>
    %55 = vector.shape_cast %54 : vector<1xf32> to vector<1x1xf32>
    %cst_26 = arith.constant 3.200000e+01 : f32
    %56 = vector.broadcast %cst_26 : f32 to vector<1x1xf32>
    %57 = arith.divf %55, %56 : vector<1x1xf32>
    %58 = vector.broadcast %52 : vector<1x32xf32> to vector<16x32xf32>
    %59 = arith.mulf %7, %58 : vector<16x32xf32>
    %cst_27 = arith.constant dense<0.000000e+00> : vector<16xf32>
    %60 = vector.multi_reduction <add>, %59, %cst_27 [1] : vector<16x32xf32> to vector<16xf32>
    %61 = vector.shape_cast %60 : vector<16xf32> to vector<16x1xf32>
    %cst_28 = arith.constant 3.125000e-02 : f32
    %62 = vector.broadcast %cst_28 : f32 to vector<16x1xf32>
    %63 = arith.mulf %61, %62 : vector<16x1xf32>
    %64 = vector.broadcast %57 : vector<1x1xf32> to vector<16x1xf32>
    %65 = arith.addf %12, %64 : vector<16x1xf32>
    %cst_29 = arith.constant 2.000000e+00 : f32
    %66 = vector.broadcast %cst_29 : f32 to vector<16x1xf32>
    %67 = arith.mulf %66, %63 : vector<16x1xf32>
    %68 = arith.addf %65, %67 : vector<16x1xf32>
    %cst_30 = arith.constant 9.99999997E-7 : f32
    %69 = vector.broadcast %cst_30 : f32 to vector<16x1xf32>
    %70 = arith.addf %68, %69 : vector<16x1xf32>
    %71 = math.rsqrt %70 : vector<16x1xf32>
    %72 = vector.extract_strided_slice %20 {offsets = [1, 0], sizes = [1, 16], strides = [1, 1]} : vector<3x16xf32> to vector<1x16xf32>
    %73 = vector.broadcast %72 : vector<1x16xf32> to vector<16x16xf32>
    %74 = arith.addf %16, %73 : vector<16x16xf32>
    %75 = vector.broadcast %71 : vector<16x1xf32> to vector<16x16xf32>
    %76 = arith.mulf %75, %74 : vector<16x16xf32>
    %77 = vector.broadcast %22 : vector<1x16xf32> to vector<16x16xf32>
    %78 = arith.addf %76, %77 : vector<16x16xf32>
    %cst_31 = arith.constant 0.000000e+00 : f32
    %79 = vector.broadcast %cst_31 : f32 to vector<16x16xf32>
    %80 = arith.maximumf %78, %79 : vector<16x16xf32>
    %81 = vector.extract_strided_slice %18 {offsets = [2, 0], sizes = [1, 32], strides = [1, 1]} : vector<3x32xf32> to vector<1x32xf32>
    %82 = arith.mulf %81, %81 : vector<1x32xf32>
    %cst_32 = arith.constant dense<0.000000e+00> : vector<1xf32>
    %83 = vector.multi_reduction <add>, %82, %cst_32 [1] : vector<1x32xf32> to vector<1xf32>
    %84 = vector.shape_cast %83 : vector<1xf32> to vector<1x1xf32>
    %cst_33 = arith.constant 3.200000e+01 : f32
    %85 = vector.broadcast %cst_33 : f32 to vector<1x1xf32>
    %86 = arith.divf %84, %85 : vector<1x1xf32>
    %87 = vector.broadcast %81 : vector<1x32xf32> to vector<16x32xf32>
    %88 = arith.mulf %7, %87 : vector<16x32xf32>
    %cst_34 = arith.constant dense<0.000000e+00> : vector<16xf32>
    %89 = vector.multi_reduction <add>, %88, %cst_34 [1] : vector<16x32xf32> to vector<16xf32>
    %90 = vector.shape_cast %89 : vector<16xf32> to vector<16x1xf32>
    %cst_35 = arith.constant 3.125000e-02 : f32
    %91 = vector.broadcast %cst_35 : f32 to vector<16x1xf32>
    %92 = arith.mulf %90, %91 : vector<16x1xf32>
    %93 = vector.broadcast %86 : vector<1x1xf32> to vector<16x1xf32>
    %94 = arith.addf %12, %93 : vector<16x1xf32>
    %cst_36 = arith.constant 2.000000e+00 : f32
    %95 = vector.broadcast %cst_36 : f32 to vector<16x1xf32>
    %96 = arith.mulf %95, %92 : vector<16x1xf32>
    %97 = arith.addf %94, %96 : vector<16x1xf32>
    %cst_37 = arith.constant 9.99999997E-7 : f32
    %98 = vector.broadcast %cst_37 : f32 to vector<16x1xf32>
    %99 = arith.addf %97, %98 : vector<16x1xf32>
    %100 = math.rsqrt %99 : vector<16x1xf32>
    %101 = vector.extract_strided_slice %20 {offsets = [2, 0], sizes = [1, 16], strides = [1, 1]} : vector<3x16xf32> to vector<1x16xf32>
    %102 = vector.broadcast %101 : vector<1x16xf32> to vector<16x16xf32>
    %103 = arith.addf %16, %102 : vector<16x16xf32>
    %104 = vector.broadcast %100 : vector<16x1xf32> to vector<16x16xf32>
    %105 = arith.mulf %104, %103 : vector<16x16xf32>
    %106 = vector.broadcast %22 : vector<1x16xf32> to vector<16x16xf32>
    %107 = arith.addf %105, %106 : vector<16x16xf32>
    %cst_38 = arith.constant 0.000000e+00 : f32
    %108 = vector.broadcast %cst_38 : f32 to vector<16x16xf32>
    %109 = arith.maximumf %107, %108 : vector<16x16xf32>
    %110 = tpu.concatenate %51, %80, %109 in 0 : vector<16x16xf32>, vector<16x16xf32>, vector<16x16xf32> -> vector<48x16xf32>
    %111 = arith.truncf %110 : vector<48x16xf32> to vector<48x16xbf16>
    %c0_39 = arith.constant 0 : index
    %c0_40 = arith.constant 0 : index
    %c0_41 = arith.constant 0 : index
    %112 = vector.load %arg6[%c0_39, %c0_40, %c0_41] : memref<1x16x16xbf16, #tpu.memory_space<vmem>>, vector<1x16x16xbf16>
    %113 = vector.shape_cast %112 : vector<1x16x16xbf16> to vector<16x16xbf16>
    %cst_42 = arith.constant dense<0.000000e+00> : vector<48x16xf32>
    %114 = tpu.matmul %111, %113, %cst_42 {dimension_numbers = #tpu.dot_dimension_numbers<[1], [0], [0], [1], [0, 0, 1, 1], [], []>} : vector<48x16xbf16>, vector<16x16xbf16>, vector<48x16xf32> -> vector<48x16xf32>
    %c0_43 = arith.constant 0 : index
    %c0_44 = arith.constant 0 : index
    %c0_45 = arith.constant 0 : index
    %115 = vector.load %arg10[%c0_43, %c0_44, %c0_45] : memref<1x1x16xf32, #tpu.memory_space<vmem>>, vector<1x1x16xf32>
    %116 = vector.shape_cast %115 : vector<1x1x16xf32> to vector<1x16xf32>
    %117 = vector.broadcast %116 : vector<1x16xf32> to vector<48x16xf32>
    %118 = arith.addf %114, %117 : vector<48x16xf32>
    %cst_46 = arith.constant 0.000000e+00 : f32
    %119 = vector.broadcast %cst_46 : f32 to vector<48x16xf32>
    %120 = arith.maximumf %118, %119 : vector<48x16xf32>
    %121 = arith.truncf %120 : vector<48x16xf32> to vector<48x16xbf16>
    %c0_47 = arith.constant 0 : index
    %c0_48 = arith.constant 0 : index
    %c0_49 = arith.constant 0 : index
    %122 = vector.load %arg7[%c0_47, %c0_48, %c0_49] : memref<1x16x8xbf16, #tpu.memory_space<vmem>>, vector<1x16x8xbf16>
    %123 = vector.shape_cast %122 : vector<1x16x8xbf16> to vector<16x8xbf16>
    %cst_50 = arith.constant dense<0.000000e+00> : vector<48x8xf32>
    %124 = tpu.matmul %121, %123, %cst_50 {dimension_numbers = #tpu.dot_dimension_numbers<[1], [0], [0], [1], [0, 0, 1, 1], [], []>} : vector<48x16xbf16>, vector<16x8xbf16>, vector<48x8xf32> -> vector<48x8xf32>
    %c0_51 = arith.constant 0 : index
    %c0_52 = arith.constant 0 : index
    %c0_53 = arith.constant 0 : index
    %125 = vector.load %arg11[%c0_51, %c0_52, %c0_53] : memref<1x1x8xf32, #tpu.memory_space<vmem>>, vector<1x1x8xf32>
    %126 = vector.shape_cast %125 : vector<1x1x8xf32> to vector<1x8xf32>
    %127 = vector.broadcast %126 : vector<1x8xf32> to vector<48x8xf32>
    %128 = arith.addf %124, %127 : vector<48x8xf32>
    %c0_54 = arith.constant 0 : index
    %c0_55 = arith.constant 0 : index
    %c0_56 = arith.constant 0 : index
    %129 = vector.load %arg8[%c0_54, %c0_55, %c0_56] : memref<1x16x8xbf16, #tpu.memory_space<vmem>>, vector<1x16x8xbf16>
    %130 = vector.shape_cast %129 : vector<1x16x8xbf16> to vector<16x8xbf16>
    %cst_57 = arith.constant dense<0.000000e+00> : vector<48x8xf32>
    %131 = tpu.matmul %121, %130, %cst_57 {dimension_numbers = #tpu.dot_dimension_numbers<[1], [0], [0], [1], [0, 0, 1, 1], [], []>} : vector<48x16xbf16>, vector<16x8xbf16>, vector<48x8xf32> -> vector<48x8xf32>
    %c0_58 = arith.constant 0 : index
    %c0_59 = arith.constant 0 : index
    %c0_60 = arith.constant 0 : index
    %132 = vector.load %arg12[%c0_58, %c0_59, %c0_60] : memref<1x1x8xf32, #tpu.memory_space<vmem>>, vector<1x1x8xf32>
    %133 = vector.shape_cast %132 : vector<1x1x8xf32> to vector<1x8xf32>
    %134 = vector.broadcast %133 : vector<1x8xf32> to vector<48x8xf32>
    %135 = arith.addf %131, %134 : vector<48x8xf32>
    %136 = vector.shape_cast %128 : vector<48x8xf32> to vector<3x16x8xf32>
    %c0_61 = arith.constant 0 : index
    %c0_62 = arith.constant 0 : index
    %c0_63 = arith.constant 0 : index
    %c0_64 = arith.constant 0 : index
    %137 = vector.load %arg13[%c0_61, %c0_62, %c0_63, %c0_64] : memref<1x3x16x8xf32, #tpu.memory_space<vmem>>, vector<1x3x16x8xf32>
    %138 = vector.shape_cast %137 : vector<1x3x16x8xf32> to vector<3x16x8xf32>
    %139 = vector.shape_cast %136 : vector<3x16x8xf32> to vector<1x3x16x8xf32>
    tpu.vector_store %arg13[%c0_61, %c0_62, %c0_63, %c0_64], %139 {strides = array<i32>} : memref<1x3x16x8xf32, #tpu.memory_space<vmem>>, vector<1x3x16x8xf32>,
    %140 = vector.shape_cast %135 : vector<48x8xf32> to vector<3x16x8xf32>
    %c0_65 = arith.constant 0 : index
    %c0_66 = arith.constant 0 : index
    %c0_67 = arith.constant 0 : index
    %c0_68 = arith.constant 0 : index
    %141 = vector.load %arg14[%c0_65, %c0_66, %c0_67, %c0_68] : memref<1x3x16x8xf32, #tpu.memory_space<vmem>>, vector<1x3x16x8xf32>
    %142 = vector.shape_cast %141 : vector<1x3x16x8xf32> to vector<3x16x8xf32>
    %143 = vector.shape_cast %140 : vector<3x16x8xf32> to vector<1x3x16x8xf32>
    tpu.vector_store %arg14[%c0_65, %c0_66, %c0_67, %c0_68], %143 {strides = array<i32>} : memref<1x3x16x8xf32, #tpu.memory_space<vmem>>, vector<1x3x16x8xf32>,
    return
  }
  func.func @transform_0(%arg0: i32, %arg1: i32) -> (i32, i32, i32) {
    %c0_i32 = arith.constant 0 : i32
    %c0_i32_0 = arith.constant 0 : i32
    return %arg0, %arg1, %c0_i32 : i32, i32, i32
  }
  func.func @transform_1(%arg0: i32, %arg1: i32) -> (i32, i32, i32) {
    %c0_i32 = arith.constant 0 : i32
    %c0_i32_0 = arith.constant 0 : i32
    %c0_i32_1 = arith.constant 0 : i32
    return %arg0, %c0_i32, %c0_i32_0 : i32, i32, i32
  }
  func.func @transform_2(%arg0: i32, %arg1: i32) -> (i32, i32, i32) {
    %c0_i32 = arith.constant 0 : i32
    %c0_i32_0 = arith.constant 0 : i32
    %c0_i32_1 = arith.constant 0 : i32
    return %arg0, %c0_i32, %c0_i32_0 : i32, i32, i32
  }
  func.func @transform_3(%arg0: i32, %arg1: i32) -> (i32, i32, i32) {
    %c0_i32 = arith.constant 0 : i32
    %c0_i32_0 = arith.constant 0 : i32
    %c0_i32_1 = arith.constant 0 : i32
    return %arg0, %c0_i32, %c0_i32_0 : i32, i32, i32
  }
  func.func @transform_4(%arg0: i32, %arg1: i32) -> (i32, i32, i32) {
    %c0_i32 = arith.constant 0 : i32
    %c0_i32_0 = arith.constant 0 : i32
    %c0_i32_1 = arith.constant 0 : i32
    return %arg0, %c0_i32, %c0_i32_0 : i32, i32, i32
  }
  func.func @transform_5(%arg0: i32, %arg1: i32) -> (i32, i32, i32) {
    %c0_i32 = arith.constant 0 : i32
    %c0_i32_0 = arith.constant 0 : i32
    %c0_i32_1 = arith.constant 0 : i32
    return %arg0, %c0_i32, %c0_i32_0 : i32, i32, i32
  }
  func.func @transform_6(%arg0: i32, %arg1: i32) -> (i32, i32, i32) {
    %c0_i32 = arith.constant 0 : i32
    %c0_i32_0 = arith.constant 0 : i32
    %c0_i32_1 = arith.constant 0 : i32
    return %arg0, %c0_i32, %c0_i32_0 : i32, i32, i32
  }
  func.func @transform_7(%arg0: i32, %arg1: i32) -> (i32, i32, i32) {
    %c0_i32 = arith.constant 0 : i32
    %c0_i32_0 = arith.constant 0 : i32
    %c0_i32_1 = arith.constant 0 : i32
    return %arg0, %c0_i32, %c0_i32_0 : i32, i32, i32
  }
  func.func @transform_8(%arg0: i32, %arg1: i32) -> (i32, i32, i32) {
    %c0_i32 = arith.constant 0 : i32
    %c0_i32_0 = arith.constant 0 : i32
    %c0_i32_1 = arith.constant 0 : i32
    return %arg0, %c0_i32, %c0_i32_0 : i32, i32, i32
  }
  func.func @transform_9(%arg0: i32, %arg1: i32) -> (i32, i32, i32) {
    %c0_i32 = arith.constant 0 : i32
    %c0_i32_0 = arith.constant 0 : i32
    %c0_i32_1 = arith.constant 0 : i32
    return %arg0, %c0_i32, %c0_i32_0 : i32, i32, i32
  }
  func.func @transform_10(%arg0: i32, %arg1: i32) -> (i32, i32, i32) {
    %c0_i32 = arith.constant 0 : i32
    %c0_i32_0 = arith.constant 0 : i32
    %c0_i32_1 = arith.constant 0 : i32
    return %arg0, %c0_i32, %c0_i32_0 : i32, i32, i32
  }
  func.func @transform_11(%arg0: i32, %arg1: i32) -> (i32, i32, i32, i32) {
    %c0_i32 = arith.constant 0 : i32
    %c0_i32_0 = arith.constant 0 : i32
    %c0_i32_1 = arith.constant 0 : i32
    return %arg0, %c0_i32, %arg1, %c0_i32_0 : i32, i32, i32, i32
  }
  func.func @transform_12(%arg0: i32, %arg1: i32) -> (i32, i32, i32, i32) {
    %c0_i32 = arith.constant 0 : i32
    %c0_i32_0 = arith.constant 0 : i32
    %c0_i32_1 = arith.constant 0 : i32
    return %arg0, %c0_i32, %arg1, %c0_i32_0 : i32, i32, i32, i32
  }
}

</mosaic_0001>

<bundles_post_ra>
// kernel: multiview_film_forward.1
= control target key start
LH: loop header
LB: loop body
LE: loop exit
PB: predicated region body
PF: predicated region fallthrough
CT: control target
= control target key end

     0   :  { %s2059_s0 = inlined_call_operand.vmem [shape: f32[2,16,32], index: 0, kind: input, shape index: {}]   ;;  %s2060_s1 = inlined_call_operand.vmem [shape: f32[2,3,32], index: 1, kind: input, shape index: {}]   ;;  %s2061_s2 = inlined_call_operand.vmem [shape: f32[2,3,16], index: 2, kind: input, shape index: {}]   ;;  %s2062_s3 = inlined_call_operand.vmem [shape: bf16[2,32,16], index: 3, kind: input, shape index: {}]   ;;  %s2063_s4 = inlined_call_operand.vmem [shape: bf16[2,16,16], index: 4, kind: input, shape index: {}]   ;;  %s2064_s5 = inlined_call_operand.vmem [shape: bf16[2,16,8], index: 5, kind: input, shape index: {}]   ;;  %s2065_s6 = inlined_call_operand.vmem [shape: bf16[2,16,8], index: 6, kind: input, shape index: {}]   ;;  %s2066_s7 = inlined_call_operand.vmem [shape: f32[2,1,16], index: 7, kind: input, shape index: {}]   ;;  %s2067_s8 = inlined_call_operand.vmem [shape: f32[2,1,16], index: 8, kind: input, shape index: {}]   ;;  %s2068_s9 = inlined_call_operand.vmem [shape: f32[2,1,8], index: 9, kind: input, shape index: {}]   ;;  %s2069_s10 = inlined_call_operand.vmem [shape: f32[2,1,8], index: 10, kind: input, shape index: {}]   ;;  %s2070_s11 = inlined_call_operand.hbm [shape: f32[2,3,16,8], index: 11, kind: output, shape index: {0}]   ;;  %s2071_s12 = inlined_call_operand.hbm [shape: f32[2,3,16,8], index: 12, kind: output, shape index: {1}]  }
   0x1   :  { %2075 = sst [smem:[#allocation12_spill]] %s2059_s0 }
   0x2   :  { %2076 = sst [smem:[#allocation13_spill]] %s2060_s1 }
   0x3   :  { %18 = vsyncpa [#allocation3], 0 }
   0x4   :  { %20 = vsyncpa [#allocation3 + $0x1], 0 }
   0x5   :  { %21 = vsyncpa [#allocation5], 0 }
   0x6   :  { %23 = vsyncpa [#allocation5 + $0x1], 0  ;;  %s1756_s21 = smov 0   ;;  %s1758_s22 = smov 0  }
   0x7   :  { %s1760_s23 = smov 0   ;;  %s1762_s24 = smov 0  }
   0x8   :  { %s1764_s25 = smov 0   ;;  %s1766_s26 = smov 0  }
   0x9 LB: > { %2077 = sst [smem:[#allocation8_spill]] %s1671_s23  ;;  %s1379_s27 = sadd.s32 4294967295, %s1683_s26   ;;  %s1683_s26 = sphi %s1766_s26, %s29_s26   ;;  %s1679_s25 = sphi %s1764_s25, %s2088_s25   ;;  %s1675_s24 = sphi %s1762_s24, %s2087_s24   ;;  %s1671_s23 = sphi %s1760_s23, %s2091_s23   ;;  %s1667_s22 = sphi %s1758_s22, %s2090_s22   ;;  %s1663_s21 = sphi %s1756_s21, %s2089_s21  }
   0xa   : > { %2078 = sst [smem:[#allocation9_spill]] %s1679_s25  ;;  %s1380_s28 = sadd.s32 4294967294, %s1683_s26  }
   0xb   : > { %s41_s29 = sadd.s32 1, %s1679_s25  ;;  %s338_s30 = sadd.s32 1, %s1671_s23 }
   0xc   : > { %p43_p0 = scmp.ge.s32.totalorder %s41_s29, 2  ;;  %p348_p1 = scmp.ne.s32.totalorder %s1671_s23, %s1667_s22 }
   0xd   : > { %p349_p2 = scmp.eq.s32.totalorder %s1379_s27, 1  ;;  %p354_p3 = scmp.ne.s32.totalorder %s1667_s22, %s1663_s21 }
   0xe   : > { %s2093_s29 = smov (%p43_p0, %s41_s29), 0  ;;  %p355_p5 = scmp.eq.s32.totalorder %s1380_s28, 1 }
   0xf   : > { %2079 = sst [smem:[#allocation10_spill]] %s2093_s29  ;;  %p1796_p4 = por %p349_p2, %p348_p1 }
  0x10   : > { %s333_s14 = ssub.s32 %s1679_s25, %s2093_s29  ;;  %p1383_p6 = scmp.ge.s32.totalorder %s1683_s26, 1 }
  0x11   : > { %p336_p7 = scmp.eq.s32.totalorder %s333_s14, 0  ;;  %p1803_p8 = por %p355_p5, %p354_p3 }
  0x12   : > { %p484_p9 = scmp.lt.s32.totalorder %s1683_s26, 3 }
  0x13   : > { %s1809_s16 = scalar_select %p336_p7, %s1671_s23, %s338_s30  }
  0x14   : > { %p485_p10 = pnand %p1383_p6, %p484_p9 }
  0x15   : > { %2082 = sst [smem:[#allocation11_spill]] %s1809_s16  ;;  %p576_p11 = scmp.lt.s32.totalorder (!%p485_p10), %s1675_s24, 1  ;;  %vm630_vm0 = vcmask (!%p485_p10), 261120   ;;  %vm717_vm1 = vcmask (!%p485_p10), 253952   ;;  %v1685_v7 = vmov (!%p485_p10), 0.0   ;;  %vm1686_vm2 = vmmov (!%p485_p10), 0  }
  0x16   : > { %488 = sbr.rel (%p485_p10) target bundleno = 901 (0x385), region = 64  ;;  %s2083_s0 = sld [smem:[#allocation12_spill]] (!%p485_p10)  ;;  %1439 = vmatprep.subr.bf16.mxu0 (!%p485_p10), %v1685_v7  ;;  %1447 = vmatprep.subr.bf16.mxu1 (!%p485_p10), %v1685_v7  ;;  %v722_v10 = vlaneseq (!%p485_p10)  ;;  %vm768_vm3 = vcmask (!%p485_p10), 254977   ;;  %vm813_vm4 = vcmask (!%p485_p10), 256002   ;;  %vm876_vm5 = vcmask (!%p485_p10), 130048  }
  0x17   : > { %s2084_s1 = sld [smem:[#allocation13_spill]] (!%p485_p10)  ;;  %1443 = vmatprep.mubr.msk.bf16.mxu0 (!%p485_p10), %vm1686_vm2, %v1685_v7  ;;  %1449 = vmatprep.mubr.msk.bf16.mxu1 (!%p485_p10), %vm1686_vm2, %v1685_v7  ;;  %vm1105_vm6 = vcmask (!%p485_p10), 64512  }
  0x18   : > { %v723_v11 = vshrl.u32 (!%p485_p10), %v722_v10, 7 }
  0x1a   : > { %v1838_v12 = vsub.s32 (!%p485_p10), 0, %v723_v11  ;;  %v1842_v23 = vsub.s32 (!%p485_p10), 1, %v723_v11  ;;  %v1844_v26 = vsub.s32 (!%p485_p10), 2, %v723_v11 }
  0x1d   : > { %s1813_s17 = scalar_select %p576_p11, %s1675_s24, 1 }
  0x1f   : > { %s1419_s18 = sshll.u32 %s1813_s17, 4  ;;  %s1386_s29 = sshll.u32 %s1813_s17, 2 }
  0x20   : > { %s583_s27 = scalar_lea.vmem %s2083_s0, %s1419_s18  ;;  %s597_s30 = scalar_lea.vmem %s2062_s3, %s1419_s18 }
  0x21   : > { %v628_v0 = vld [vmem:[%s583_s27] sm:$0xff]  ;;  %v629_v1 = vld [vmem:[%s583_s27 + $0x8] sm:$0xff]  ;;  %s588_s23 = scalar_lea.vmem %s2084_s1, %s1386_s29  ;;  %s615_s28 = scalar_lea.vmem %s2066_s7, %s1813_s17 }
  0x22   : > { %v631_v2 = vsel %vm630_vm0, %v628_v0, 0.0  ;;  %v634_v3 = vsel %vm630_vm0, %v629_v1, 0.0  ;;  %v713_v4 = vld [vmem:[%s588_s23] sm:$0x7]  ;;  %v1557_v9 = vld [vmem:[%s597_s30 + $0x8] sm:$0xff]   ;;  %s1859_s23 = sshll.u32 %s1813_s17, 3  ;;  %s618_s19 = scalar_lea.vmem %s2067_s8, %s1813_s17 }
  0x23   : > { %632 = vadd.xlane.f32.xlu0 %v631_v2  ;;  %v716_v5 = vmul.f32 %v713_v4, %v713_v4  ;;  %v1556_v6 = vld [vmem:[%s597_s30] sm:$0xff]   ;;  %v725_v16 = vrot.slane %v713_v4, %v1838_v12  ;;  %v776_v30 = vrot.slane %v713_v4, %v1842_v23  ;;  %v821_v35 = vrot.slane %v713_v4, %v1844_v26  ;;  %s602_s18 = scalar_lea.vmem %s2063_s4, %s1859_s23  ;;  %s612_s27 = scalar_lea.vmem %s2065_s6, %s1859_s23 }
  0x24   : > { %1440 = vmatpush3.bf16.msra.mxu0 %v1556_v6  ;;  %v1558_v43 = vld [vmem:[%s602_s18] sm:$0xff]   ;;  %s607_s30 = scalar_lea.vmem %s2064_s5, %s1859_s23  ;;  %s592_s18 = scalar_lea.vmem %s2061_s2, %s1386_s29 }
  0x25   : > { %v718_v8 = vsel %vm717_vm1, %v716_v5, 0.0  ;;  %1441 = vmatprep.subr.bf16.mxu0 %v1685_v7  ;;  %v769_v31 = vsel %vm768_vm3, %v716_v5, 0.0  ;;  %v814_v39 = vsel %vm813_vm4, %v716_v5, 0.0  ;;  %1448 = vmatpush3.bf16.msra.mxu1 %v1558_v43  ;;  %s1927_s23 = sand.u32 1, %s1667_s22  }
  0x26   : > { %719 = vadd.xlane.f32.xlu1 %v718_v8  ;;  %1475 = vmatprep.subr.bf16.mxu1 %v1685_v7  ;;  %s1489_s25 = smul.u32 48, %s1927_s23 }
  0x27   : > { %635 = vadd.xlane.f32.xlu0 %v634_v3 }
  0x28   : > { %1442 = vmatpush3.bf16.msra.mxu0 %v1557_v9  ;;  %s1938_s16 = scalar_lea.vmem [#allocation2], %s1489_s25 }
  0x29   : > { %1461 = vmatprep.subr.bf16.mxu0 %v1685_v7 }
  0xb0   : > { %v633_v13 = vpop.xlane.xlu0 %632 }
  0xb1   : > { %v638_v14 = vmul.f32 0.03125, %v633_v13 }
  0xb3   : > { %v640_v15 = vsub.f32 %v628_v0, %v638_v14  ;;  %v720_v44 = vpop.xlane.xlu1 %719 }
  0xb4   : > { %v636_v17 = vpop.xlane.xlu0 %635  ;;  %v721_v53 = vmul.f32 0.03125, %v720_v44 }
  0xb5   : > { %v639_v18 = vmul.f32 0.03125, %v636_v17  ;;  %v642_v19 = vmul.f32 %v640_v15, %v640_v15  ;;  %v726_v22 = vmul.f32 %v725_v16, %v640_v15  ;;  %v777_v34 = vmul.f32 %v776_v30, %v640_v15 }
  0xb6   : > { %v822_v38 = vmul.f32 %v821_v35, %v640_v15  ;;  %v739_v59 = vrot.slane %v721_v53, %v1838_v12 }
  0xb7   : > { %v641_v20 = vsub.f32 %v629_v1, %v639_v18  ;;  %v644_v21 = vsel %vm630_vm0, %v642_v19, 0.0  ;;  %v728_v27 = vsel %vm630_vm0, %v726_v22, 0.0  ;;  %v779_v37 = vsel %vm630_vm0, %v777_v34, 0.0 }
  0xb8   : > { %645 = vadd.xlane.f32.xlu1 %v644_v21  ;;  %v824_v40 = vsel %vm630_vm0, %v822_v38, 0.0 }
  0xb9   : > { %v652_v24 = vpack.c.bf16 %v641_v20, %v640_v15  ;;  %v643_v25 = vmul.f32 %v641_v20, %v641_v20  ;;  %v727_v29 = vmul.f32 %v725_v16, %v641_v20  ;;  %v778_v33 = vmul.f32 %v776_v30, %v641_v20 }
  0xba   : > { %v823_v41 = vmul.f32 %v821_v35, %v641_v20 }
  0xbb   : > { %1444 = vmatmul.mubr.msk.bf16.vlgmr.msra.gmra.mrb[0].mxu0 %vm630_vm0, %v652_v24  ;;  %v647_v28 = vsel %vm630_vm0, %v643_v25, 0.0  ;;  %v731_v32 = vsel %vm630_vm0, %v727_v29, 0.0  ;;  %v782_v36 = vsel %vm630_vm0, %v778_v33, 0.0  ;;  %v714_v33 = vld [vmem:[%s592_s18] sm:$0x7]  ;;  %s1942_s18 = scalar_lea.vmem [#allocation4], %s1489_s25 }
  0xbc   : > { %729 = vadd.xlane.f32.xlu1 %v728_v27  ;;  %648 = vadd.xlane.f32.xlu0 %v647_v28  ;;  %v827_v42 = vsel %vm630_vm0, %v823_v41, 0.0  ;;  %v753_v34 = vrot.slane %v714_v33, %v1838_v12  ;;  %v804_v35 = vrot.slane %v714_v33, %v1842_v23  ;;  %s1119_s25 = scalar_lea.sflag [#allocation3], %s1927_s23 }
  0xbd   : > { %1463 = vmatprep.mubr.msk.bf16.mxu0 %vm1686_vm2, %v1685_v7 }
  0xc0   : > { %770 = vadd.xlane.f32.xlu1 %v769_v31  ;;  %732 = vadd.xlane.f32.xlu0 %v731_v32 }
  0xc4   : > { %783 = vadd.xlane.f32.xlu1 %v782_v36  ;;  %780 = vadd.xlane.f32.xlu0 %v779_v37  ;;  %v849_v36 = vrot.slane %v714_v33, %v1844_v26 }
  0xc8   : > { %825 = vadd.xlane.f32.xlu1 %v824_v40  ;;  %815 = vadd.xlane.f32.xlu0 %v814_v39 }
  0xcc   : > { %828 = vadd.xlane.f32.xlu0 %v827_v42 }
 0x145   : > { %v646_v45 = vpop.xlane.xlu1 %645 }
 0x146   : > { %v650_v60 = vmul.f32 0.03125, %v646_v45  ;;  %v1399_v45 = vld [vmem:[%s615_s28] ss:$0 sm:$0xff]  ;;  %s621_s28 = scalar_lea.vmem %s2068_s9, %s1813_s17 }
 0x148   : > { %v740_v8 = vadd.f32 %v739_v59, %v650_v60 }
 0x149   : > { %v649_v46 = vpop.xlane.xlu0 %648  ;;  %v730_v47 = vpop.xlane.xlu1 %729 }
 0x14a   : > { %v734_v56 = vmul.f32 0.03125, %v730_v47  ;;  %v651_v4 = vmul.f32 0.03125, %v649_v46 }
 0x14c   : > { %v742_v1 = vmul.f32 2.0, %v734_v56  ;;  %v741_v16 = vadd.f32 %v739_v59, %v651_v4 }
 0x14d   : > { %v733_v48 = vpop.xlane.xlu0 %732  ;;  %v771_v49 = vpop.xlane.xlu1 %770 }
 0x14e   : > { %v772_v55 = vmul.f32 0.03125, %v771_v49  ;;  %v735_v0 = vmul.f32 0.03125, %v733_v48  ;;  %v744_v13 = vadd.f32 %v742_v1, %v740_v8 }
 0x150   : > { %v790_v63 = vrot.slane %v772_v55, %v1842_v23  ;;  %v743_v11 = vmul.f32 2.0, %v735_v0  ;;  %v746_v24 = vadd.f32 1e-06, %v744_v13 }
 0x151   : > { %v781_v50 = vpop.xlane.xlu0 %780  ;;  %v784_v51 = vpop.xlane.xlu1 %783 }
 0x152   : > { %v785_v57 = vmul.f32 0.03125, %v781_v50  ;;  %v786_v2 = vmul.f32 0.03125, %v784_v51  ;;  %v791_v10 = vadd.f32 %v790_v63, %v650_v60  ;;  %v792_v19 = vadd.f32 %v790_v63, %v651_v4 }
 0x153   : > { %v745_v21 = vadd.f32 %v743_v11, %v741_v16  ;;  %1561 = vrsqrt.f32 %v746_v24  ;;  %v1400_v11 = vld [vmem:[%s618_s19] ss:$0 sm:$0xff]  ;;  %s1490_s19 = smul.u32 768, %s1675_s24  ;;  %s1687_s24 = smov [#allocation2]  }
 0x154   : > { %v793_v5 = vmul.f32 2.0, %v785_v57  ;;  %v794_v14 = vmul.f32 2.0, %v786_v2  ;;  %s1577_s20 = sshll.u32 %s1687_s24, 4  ;;  %s1578_s20 = int_to_ptr.vmem [resolvable:$false] %s1577_s20 }
 0x155   : > { %v816_v52 = vpop.xlane.xlu0 %815  ;;  %v826_v58 = vpop.xlane.xlu1 %825  ;;  %v747_v30 = vadd.f32 1e-06, %v745_v21  ;;  %s1579_s1 = scalar_lea.vmem %s1578_s20, 1536 }
 0x156   : > { %v817_v54 = vmul.f32 0.03125, %v816_v52  ;;  %v830_v3 = vmul.f32 0.03125, %v826_v58  ;;  %v795_v17 = vadd.f32 %v793_v5, %v791_v10  ;;  %v796_v25 = vadd.f32 %v794_v14, %v792_v19  ;;  %v1559_v5 = vld [vmem:[%s612_s27] sm:$0xff]   ;;  %s624_s27 = scalar_lea.vmem %s2069_s10, %s1813_s17  ;;  %s1139_s17 = sshll.u32 %s1938_s16, 4  ;;  %s1961_s17 = int_to_ptr.vmem [resolvable:$true] %s1139_s17 }
 0x157   : > { %v1560_v10 = vld [vmem:[%s607_s30] sm:$0xff]   ;;  %s1157_s30 = sshll.u32 %s1942_s18, 4  ;;  %s1573_s0 = scalar_lea.vmem %s1961_s17, 768  ;;  %s1977_s30 = int_to_ptr.vmem [resolvable:$true] %s1157_s30 }
 0x158   : > { %v835_v61 = vrot.slane %v817_v54, %v1844_v26  ;;  %v838_v15 = vmul.f32 2.0, %v830_v3  ;;  %v797_v27 = vadd.f32 1e-06, %v795_v17  ;;  %v798_v31 = vadd.f32 1e-06, %v796_v25  ;;  %1462 = vmatpush3.bf16.msra.mxu0 %v1560_v10  ;;  %p1574_p12 = scmp.ne.s32.totalorder %s1961_s17, %s1573_s0  ;;  %p1580_p1 = scmp.lt.s32.totalorder %s1961_s17, %s1578_s20 }
 0x159   : > { %v829_v62 = vpop.xlane.xlu0 %828  ;;  %p1581_p2 = scmp.lt.s32.totalorder %s1579_s1, %s1573_s0 }
 0x15a   : > { %v831_v6 = vmul.f32 0.03125, %v829_v62  ;;  %v836_v9 = vadd.f32 %v835_v61, %v650_v60  ;;  %v837_v22 = vadd.f32 %v835_v61, %v651_v4  ;;  %1563 = vrsqrt.f32 %v797_v27  ;;  %p1575_p13 = pnand %p1574_p12, %p1796_p4 }
 0x15b   : > { %p1582_p3 = por %p1581_p2, %p1580_p1 }
 0x15c   : > { %v839_v18 = vmul.f32 2.0, %v831_v6  ;;  %v840_v20 = vadd.f32 %v838_v15, %v836_v9  ;;  %p1576_p0 = pneg %p1575_p13 }
 0x15d   : > { %v1562_v37 = vpop.eup %1561 }
 0x15e   : > { %v841_v28 = vadd.f32 %v839_v18, %v837_v22  ;;  %v842_v29 = vadd.f32 1e-06, %v840_v20  ;;  %p1583_p5 = pnand %p1582_p3, %p1576_p0 }
 0x160   : > { %v843_v32 = vadd.f32 1e-06, %v841_v28  ;;  %1565 = vrsqrt.f32 %v842_v29 }
 0x161   : > { %1567 = vrsqrt.f32 %v747_v30 }
 0x162   : > { %1569 = vrsqrt.f32 %v798_v31 }
 0x163   : > { %1571 = vrsqrt.f32 %v843_v32 }
 0x164   : > { %v1564_v39 = vpop.eup %1563 }
 0x16a   : > { %v1566_v44 = vpop.eup %1565 }
 0x16b   : > { %v1568_v47 = vpop.eup %1567 }
 0x16c   : > { %v1570_v50 = vpop.eup %1569 }
 0x16d   : > { %v1572_v53 = vpop.eup %1571 }
 0x18e   : > { %v706_v38 = vpop.f32.mrb[0].mxu0 }
 0x18f   : > { %v754_v40 = vadd.f32 %v753_v34, %v706_v38  ;;  %v805_v41 = vadd.f32 %v804_v35, %v706_v38  ;;  %v850_v42 = vadd.f32 %v849_v36, %v706_v38  ;;  %v1445_v43 = vpop.f32.mrb[1].mxu0 }
 0x190   : > { %v709_v46 = vpop.f32.mrb[2].mxu0 }
 0x191   : > { %v756_v12 = vmul.f32 %v1562_v37, %v754_v40  ;;  %v807_v48 = vmul.f32 %v1564_v39, %v805_v41  ;;  %v852_v23 = vmul.f32 %v1566_v44, %v850_v42  ;;  %v755_v49 = vadd.f32 %v753_v34, %v709_v46  ;;  %v1446_v26 = vpop.f32.mrb[3].mxu0  ;;  %v1410_v42 = vld [vmem:[%s624_s27] ss:$0 sm:$0xff]  ;;  %s1975_s27 = scalar_lea.hbm %s2071_s12, %s1490_s19 }
 0x192   : > { %v806_v51 = vadd.f32 %v804_v35, %v709_v46  ;;  %v851_v52 = vadd.f32 %v849_v36, %v709_v46 }
 0x193   : > { %v764_v54 = vadd.f32 %v1399_v45, %v756_v12  ;;  %v757_v55 = vmul.f32 %v1568_v47, %v755_v49  ;;  %v809_v56 = vadd.f32 %v1399_v45, %v807_v48  ;;  %v854_v57 = vadd.f32 %v1399_v45, %v852_v23 }
 0x194   : > { %v808_v58 = vmul.f32 %v1570_v50, %v806_v51  ;;  %v853_v59 = vmul.f32 %v1572_v53, %v851_v52 }
 0x195   : > { %v765_v60 = vadd.f32 %v1399_v45, %v757_v55  ;;  %v766_v63 = vmax.f32 %v764_v54, 0.0  ;;  %v811_v1 = vmax.f32 %v809_v56, 0.0  ;;  %v856_v2 = vmax.f32 %v854_v57, 0.0 }
 0x196   : > { %v810_v61 = vadd.f32 %v1399_v45, %v808_v58  ;;  %v855_v62 = vadd.f32 %v1399_v45, %v853_v59 }
 0x197   : > { %v767_v0 = vmax.f32 %v765_v60, 0.0 }
 0x198   : > { %v812_v3 = vmax.f32 %v810_v61, 0.0  ;;  %v857_v4 = vmax.f32 %v855_v62, 0.0 }
 0x199   : > { %v858_v6 = vpack.c.bf16 %v767_v0, %v766_v63 }
 0x19a   : > { %v859_v8 = vpack.c.bf16 %v812_v3, %v811_v1  ;;  %v860_v9 = vpack.c.bf16 %v857_v4, %v856_v2 }
 0x19b   : > { %1450 = vmatmul.mubr.msk.bf16.vlgmr.msra.gmra.mrb[0].mxu1 %vm876_vm5, %v858_v6 }
 0x19c   : > { %1453 = vmatprep.mubr.msk.bf16.mxu1 %vm1686_vm2, %v1685_v7  ;;  %1476 = vmatpush3.bf16.msra.mxu1 %v1559_v5 }
 0x1a3   : > { %1454 = vmatmul.mubr.msk.bf16.gmra.mrb[4].mxu1 %vm876_vm5, %v859_v8 }
 0x1a4   : > { %1457 = vmatprep.mubr.msk.bf16.mxu1 %vm1686_vm2, %v1685_v7 }
 0x1ab   : > { %1458 = vmatmul.mubr.msk.bf16.gmra.mrb[8].mxu1 %vm876_vm5, %v860_v9 }
 0x1ac   : > { %1477 = vmatprep.mubr.msk.bf16.mxu1 %vm1686_vm2, %v1685_v7 }
 0x26e   : > { %v920_v13 = vpop.f32.mrb[0].mxu1 }
 0x26f   : > { %v921_v14 = vadd.f32 %v1400_v11, %v920_v13  ;;  %v1451_v15 = vpop.f32.mrb[1].mxu1 }
 0x270   : > { %v923_v16 = vpop.f32.mrb[2].mxu1 }
 0x271   : > { %v924_v17 = vadd.f32 %v1400_v11, %v923_v16  ;;  %v1452_v18 = vpop.f32.mrb[3].mxu1  ;;  %v943_v19 = vmax.f32 %v921_v14, 0.0 }
 0x273   : > { %v944_v20 = vmax.f32 %v924_v17, 0.0 }
 0x275   : > { %v949_v21 = vpack.c.bf16 %v944_v20, %v943_v19 }
 0x276   : > { %v928_v22 = vpop.f32.mrb[4].mxu1 }
 0x277   : > { %v929_v24 = vadd.f32 %v1400_v11, %v928_v22  ;;  %v1455_v25 = vpop.f32.mrb[5].mxu1  ;;  %1464 = vmatmul.mubr.msk.bf16.vlgmr.msra.gmra.mrb[4].mxu0 %vm876_vm5, %v949_v21  ;;  %1478 = vmatmul.mubr.msk.bf16.vlgmr.msra.gmra.mrb[12].mxu1 %vm876_vm5, %v949_v21 }
 0x278   : > { %v931_v27 = vpop.f32.mrb[6].mxu1  ;;  %1467 = vmatprep.mubr.msk.bf16.mxu0 %vm1686_vm2, %v1685_v7  ;;  %1481 = vmatprep.mubr.msk.bf16.mxu1 %vm1686_vm2, %v1685_v7 }
 0x279   : > { %v932_v28 = vadd.f32 %v1400_v11, %v931_v27  ;;  %v1456_v29 = vpop.f32.mrb[7].mxu1  ;;  %v945_v30 = vmax.f32 %v929_v24, 0.0 }
 0x27b   : > { %v946_v31 = vmax.f32 %v932_v28, 0.0 }
 0x27d   : > { %v950_v32 = vpack.c.bf16 %v946_v31, %v945_v30 }
 0x27e   : > { %v936_v33 = vpop.f32.mrb[8].mxu1 }
 0x27f   : > { %v937_v34 = vadd.f32 %v1400_v11, %v936_v33  ;;  %v1459_v35 = vpop.f32.mrb[9].mxu1  ;;  %1468 = vmatmul.mubr.msk.bf16.gmra.mrb[8].mxu0 %vm876_vm5, %v950_v32  ;;  %1482 = vmatmul.mubr.msk.bf16.gmra.mrb[16].mxu1 %vm876_vm5, %v950_v32 }
 0x280   : > { %v939_v36 = vpop.f32.mrb[10].mxu1  ;;  %1471 = vmatprep.mubr.msk.bf16.mxu0 %vm1686_vm2, %v1685_v7  ;;  %1485 = vmatprep.mubr.msk.bf16.mxu1 %vm1686_vm2, %v1685_v7  ;;  %v1405_v7 = vld [vmem:[%s621_s28] ss:$0 sm:$0xff]  ;;  %s1970_s28 = scalar_lea.hbm %s2070_s11, %s1490_s19 }
 0x281   : > { %v940_v37 = vadd.f32 %v1400_v11, %v939_v36  ;;  %v1460_v38 = vpop.f32.mrb[11].mxu1  ;;  %v947_v39 = vmax.f32 %v937_v34, 0.0 }
 0x283   : > { %v948_v40 = vmax.f32 %v940_v37, 0.0 }
 0x285   : > { %v951_v41 = vpack.c.bf16 %v948_v40, %v947_v39 }
 0x287   : > { %1472 = vmatmul.mubr.msk.bf16.gmra.mrb[12].mxu0 %vm876_vm5, %v951_v41  ;;  %1486 = vmatmul.mubr.msk.bf16.gmra.mrb[20].mxu1 %vm876_vm5, %v951_v41 }
 0x34a   : > { %v1010_v43 = vpop.f32.mrb[4].mxu0  ;;  %v1082_v44 = vpop.f32.mrb[12].mxu1 }
 0x34b   : > { %v1011_v45 = vadd.f32 %v1405_v7, %v1010_v43  ;;  %v1083_v46 = vadd.f32 %v1410_v42, %v1082_v44  ;;  %v1465_v47 = vpop.f32.mrb[5].mxu0  ;;  %v1479_v12 = vpop.f32.mrb[13].mxu1 }
 0x34c   : > { %v1013_v48 = vpop.f32.mrb[6].mxu0  ;;  %v1085_v23 = vpop.f32.mrb[14].mxu1 }
 0x34d   : > { %1106 = vst.msk [vmem:[%s1938_s16] sm:$0xff] %vm1105_vm6, %v1011_v45  ;;  %1112 = vst.msk [vmem:[%s1942_s18] sm:$0xff] %vm1105_vm6, %v1083_v46  ;;  %v1014_v49 = vadd.f32 %v1405_v7, %v1013_v48  ;;  %v1086_v26 = vadd.f32 %v1410_v42, %v1085_v23  ;;  %v1466_v50 = vpop.f32.mrb[7].mxu0  ;;  %v1480_v51 = vpop.f32.mrb[15].mxu1 }
 0x34f   : > { %1107 = vst.msk [vmem:[%s1938_s16 + $0x8] sm:$0xff] %vm1105_vm6, %v1014_v49  ;;  %1113 = vst.msk [vmem:[%s1942_s18 + $0x8] sm:$0xff] %vm1105_vm6, %v1086_v26 }
 0x352   : > { %v1018_v52 = vpop.f32.mrb[8].mxu0  ;;  %v1090_v53 = vpop.f32.mrb[16].mxu1 }
 0x353   : > { %v1019_v54 = vadd.f32 %v1405_v7, %v1018_v52  ;;  %v1091_v55 = vadd.f32 %v1410_v42, %v1090_v53  ;;  %v1469_v56 = vpop.f32.mrb[9].mxu0  ;;  %v1483_v57 = vpop.f32.mrb[17].mxu1 }
 0x354   : > { %v1021_v58 = vpop.f32.mrb[10].mxu0  ;;  %v1093_v59 = vpop.f32.mrb[18].mxu1 }
 0x355   : > { %1108 = vst.msk [vmem:[%s1938_s16 + $0x10] sm:$0xff] %vm1105_vm6, %v1019_v54  ;;  %1114 = vst.msk [vmem:[%s1942_s18 + $0x10] sm:$0xff] %vm1105_vm6, %v1091_v55  ;;  %v1022_v60 = vadd.f32 %v1405_v7, %v1021_v58  ;;  %v1094_v61 = vadd.f32 %v1410_v42, %v1093_v59  ;;  %v1470_v62 = vpop.f32.mrb[11].mxu0  ;;  %v1484_v63 = vpop.f32.mrb[19].mxu1 }
 0x357   : > { %1109 = vst.msk [vmem:[%s1938_s16 + $0x18] sm:$0xff] %vm1105_vm6, %v1022_v60  ;;  %1115 = vst.msk [vmem:[%s1942_s18 + $0x18] sm:$0xff] %vm1105_vm6, %v1094_v61 }
 0x35a   : > { %v1026_v0 = vpop.f32.mrb[12].mxu0  ;;  %v1098_v1 = vpop.f32.mrb[20].mxu1 }
 0x35b   : > { %v1027_v2 = vadd.f32 %v1405_v7, %v1026_v0  ;;  %v1099_v3 = vadd.f32 %v1410_v42, %v1098_v1  ;;  %v1473_v4 = vpop.f32.mrb[13].mxu0  ;;  %v1487_v5 = vpop.f32.mrb[21].mxu1 }
 0x35c   : > { %v1029_v6 = vpop.f32.mrb[14].mxu0  ;;  %v1101_v8 = vpop.f32.mrb[22].mxu1 }
 0x35d   : > { %1110 = vst.msk [vmem:[%s1938_s16 + $0x20] sm:$0xff] %vm1105_vm6, %v1027_v2  ;;  %1116 = vst.msk [vmem:[%s1942_s18 + $0x20] sm:$0xff] %vm1105_vm6, %v1099_v3  ;;  %v1030_v9 = vadd.f32 %v1405_v7, %v1029_v6  ;;  %v1102_v10 = vadd.f32 %v1410_v42, %v1101_v8  ;;  %v1474_v11 = vpop.f32.mrb[15].mxu0  ;;  %v1488_v13 = vpop.f32.mrb[23].mxu1 }
 0x35f   : > { %1111 = vst.msk [vmem:[%s1938_s16 + $0x28] sm:$0xff] %vm1105_vm6, %v1030_v9  ;;  %1117 = vst.msk [vmem:[%s1942_s18 + $0x28] sm:$0xff] %vm1105_vm6, %v1102_v10 }
 0x360   : > { %1586 = shalt.err (!%p1583_p5)
}
 0x361   : > { %s1587_s16 = scalar_lea.hbm %s1970_s28, 768  ;;  %s1591_s29 = scalar_lea.hbm %s2070_s11, 1536 }
 0x362   : > { %p1588_p6 = scmp.ne.s32.totalorder %s1970_s28, %s1587_s16  ;;  %p1592_p10 = scmp.lt.u32.totalorder %s1970_s28, %s2070_s11 }
 0x363   : > { %p1593_p11 = scmp.lt.u32.totalorder %s1591_s29, %s1587_s16  ;;  %p1595_p13 = scmp.lt.u32.totalorder %s1587_s16, %s1970_s28 }
 0x364   : > { %p1589_p7 = pnand %p1588_p6, %p1796_p4 }
 0x365   : > { %p1594_p12 = por %p1593_p11, %p1592_p10 }
 0x366   : > { %p1590_p9 = pneg %p1589_p7 }
 0x367   : > { %p1596_p0 = por %p1595_p13, %p1594_p12 }
 0x369   : > { %p1597_p1 = pnand %p1596_p0, %p1590_p9 }
 0x36b   : > { %1600 = shalt.err (!%p1597_p1)
}
 0x36c   : > { %s1688_s0 = smov 128   ;;  %s1689_s1 = smov 8  }
 0x36d   : > { %1492 = dma.vmem_to_hbm [thread:$0]  (%p1796_p4), %s1961_s17, 768, %s1970_s28, %s1119_s25, %s1688_s0, %s1688_s0, %s1689_s1  }
 0x36e   : > { %s1124_s20 = scalar_lea.sflag [#allocation5], %s1927_s23  ;;  %s1601_s16 = scalar_lea.vmem %s1977_s30, 768 }
 0x36f   : > { %p1602_p2 = scmp.ne.s32.totalorder %s1977_s30, %s1601_s16  ;;  %s1690_s18 = smov [#allocation4]  }
 0x370   : > { %s1605_s19 = sshll.u32 %s1690_s18, 4  ;;  %s1606_s19 = int_to_ptr.vmem [resolvable:$false] %s1605_s19 }
 0x371   : > { %p1603_p3 = pnand %p1602_p2, %p1796_p4  ;;  %s1607_s29 = scalar_lea.vmem %s1606_s19, 1536 }
 0x372   : > { %p1608_p6 = scmp.lt.s32.totalorder %s1977_s30, %s1606_s19  ;;  %p1609_p7 = scmp.lt.s32.totalorder %s1607_s29, %s1601_s16 }
 0x373   : > { %p1604_p5 = pneg %p1603_p3 }
 0x374   : > { %p1610_p9 = por %p1609_p7, %p1608_p6 }
 0x376   : > { %p1611_p10 = pnand %p1610_p9, %p1604_p5 }
 0x378   : > { %1614 = shalt.err (!%p1611_p10)
}
 0x379   : > { %s1615_s17 = scalar_lea.hbm %s1975_s27, 768  ;;  %s1619_s14 = scalar_lea.hbm %s2071_s12, 1536 }
 0x37a   : > { %p1616_p11 = scmp.ne.s32.totalorder %s1975_s27, %s1615_s17  ;;  %p1620_p0 = scmp.lt.u32.totalorder %s1975_s27, %s2071_s12 }
 0x37b   : > { %p1621_p1 = scmp.lt.u32.totalorder %s1619_s14, %s1615_s17  ;;  %p1623_p3 = scmp.lt.u32.totalorder %s1615_s17, %s1975_s27 }
 0x37c   : > { %p1617_p12 = pnand %p1616_p11, %p1796_p4 }
 0x37d   : > { %p1622_p2 = por %p1621_p1, %p1620_p0 }
 0x37e   : > { %p1618_p13 = pneg %p1617_p12 }
 0x37f   : > { %p1624_p5 = por %p1623_p3, %p1622_p2 }
 0x381   : > { %p1625_p6 = pnand %p1624_p5, %p1618_p13 }
 0x383   : > { %1628 = shalt.err (!%p1625_p6)
}
 0x384   : > { %1493 = dma.vmem_to_hbm [thread:$0]  (%p1796_p4), %s1977_s30, 768, %s1975_s27, %s1124_s20, %s1688_s0, %s1688_s0, %s1689_s1  }
 0x385 PF: > { %p1503_p7 = scmp.ge.s32.totalorder %s1683_s26, 2  ;;  %s1172_s16 = sand.u32 1, %s1663_s21  }
 0x386   : > { %s1173_s19 = scalar_lea.sflag [#allocation3], %s1172_s16 }
 0x387   : > { %p1497_p9 = pnand %p1503_p7, %p1803_p8 }
 0x389   : > { %1654 = dma.done.wait (!%p1497_p9), %s1173_s19, 768  }
 0x38a   : > { %1656 = vsyncadd (!%p1497_p9), %s1173_s19, 4294966528  ;;  %s1182_s13 = scalar_lea.sflag [#allocation5], %s1172_s16 }
 0x38b   : > { %1658 = dma.done.wait (!%p1497_p9), %s1182_s13, 768  }
 0x38c   : > { %1660 = vsyncadd (!%p1497_p9), %s1182_s13, 4294966528  ;;  %s29_s26 = sadd.s32 1, %s1683_s26   ;;  %s2085_s23 = sld [smem:[#allocation8_spill]] }
 0x38d   : > { %p26_p10 = scmp.ge.s32.totalorder %s29_s26, 4   ;;  %s2086_s30 = sld [smem:[#allocation11_spill]] }
 0x38e   : > { %s2087_s24 = sld [smem:[#allocation9_spill]]  ;;  %s2088_s25 = sld [smem:[#allocation10_spill]] }
 0x38f   : > { %s2089_s21 = smov %s1667_s22  ;;  %28 = sbr.rel (!%p26_p10) target bundleno = 9 (0x9), region = 146 }
 0x392   : > { %s2090_s22 = smov %s2085_s23 }
 0x393   : > { %s2091_s23 = smov %s2086_s30 }
 0x396   :  { %1187 = vsyncpa [#allocation3], 1 }
 0x397   :  { %1189 = vsyncpa [#allocation3 + $0x1], 1 }
 0x398   :  { %1190 = vsyncpa [#allocation5], 1 }
 0x399   :  { %1192 = vsyncpa [#allocation5 + $0x1], 1 }

</bundles_post_ra>
